<compile_context>
chip_gen: v7x
topology: tpu7x:2x2x1
jax: 0.10.0
libtpu: 0.0.40
codegen_flags: <defaults>
</compile_context>

<pallas_src>
import jax
import jax.numpy as jnp
from jax.experimental import pallas as pl
from jax.experimental.pallas import tpu as pltpu


def _round_up(x: int, m: int) -> int:
    return ((x + m - 1) // m) * m


def _lut_conditioner_kernel(tok_ref, lut_ref, out_ref):
    # tok_ref: (TILE_N, 1)        int32   effective token ids (sentinel = n_bins)
    # lut_ref: (n_bins, out_dim)  float32 fused table: embed @ W^T + b
    # out_ref: (TILE_N, out_dim)  out_dtype
    n_bins = lut_ref.shape[0]
    tok = tok_ref[...]                                               # (TILE_N, 1)
    ids = jax.lax.broadcasted_iota(jnp.int32, (tok.shape[0], n_bins), 1)
    # Sentinel id (== n_bins, used for masked and row-padded positions) matches
    # no column -> all-zero one-hot row -> all-zero output row (bias included),
    # which equals (x @ W^T + b) * mask for a binary mask.
    onehot = (tok == ids).astype(jnp.float32)                        # (TILE_N, n_bins)
    res = jnp.dot(onehot, lut_ref[...],
                  preferred_element_type=jnp.float32,
                  precision=jax.lax.Precision.HIGHEST)               # exact f32 lookup
    out_ref[...] = res.astype(out_ref.dtype)


def prepare_fused_table(embed_w, proj_w, proj_b):
    """Parameter prep (once per model, not per forward): fuse LUT + projection.

    fused[i] = embed_w[i] @ proj_w.T + proj_b   -> (n_bins, out_dim), float32.
    """
    return (jnp.dot(embed_w.astype(jnp.float32), proj_w.T.astype(jnp.float32),
                    preferred_element_type=jnp.float32,
                    precision=jax.lax.Precision.HIGHEST)
            + proj_b.astype(jnp.float32)[None, :])


def lut_conditioner_forward(tokens, mask, fused_table, *, out_dtype=jnp.float32,
                            tile_cap=2048):
    """JAX wrapper mirroring LUTConditioner.forward((tokens, mask)).

    fused_table: (n_bins, out_dim) from prepare_fused_table (precomputed).
    Returns (embeds [B, T, out_dim] out_dtype, mask), like the PyTorch module.
    """
    B, T = tokens.shape
    n_bins, out_dim = fused_table.shape
    N = B * T

    # Fold the padding mask into the token ids (removes the mask operand from
    # the kernel entirely). Binary mask assumed.
    tok_eff = jnp.where(mask > 0, tokens.astype(jnp.int32), n_bins).reshape(N)

    # Row tile: multiple of 8, capped at tile_cap, chosen so the grid has at
    # least 2 steps whenever N > 8 (keeps both v7x TensorCores busy; harmless
    # on single-TC v5e/v6e).
    TILE_N = min(tile_cap, max(8, _round_up(pl.cdiv(N, 2), 8)))
    N_pad = _round_up(N, TILE_N)

    # Single contiguous pad; padded rows carry the sentinel -> exact zeros.
    tok2d = jnp.pad(tok_eff, (0, N_pad - N),
                    constant_values=n_bins).reshape(N_pad, 1)

    out = pl.pallas_call(
        _lut_conditioner_kernel,
        out_shape=jax.ShapeDtypeStruct((N_pad, out_dim), out_dtype),
        grid_spec=pltpu.PrefetchScalarGridSpec(
            num_scalar_prefetch=0,
            grid=(N_pad // TILE_N,),
            in_specs=[
                pl.BlockSpec((TILE_N, 1), lambda i: (i, 0)),        # token ids
                pl.BlockSpec((n_bins, out_dim), lambda i: (0, 0)),  # fused LUT (VMEM-resident)
            ],
            # Un-padded lane width: block last dim equals the full last dim,
            # so no wrapper-side lane slice is needed afterwards.
            out_specs=pl.BlockSpec((TILE_N, out_dim), lambda i: (i, 0)),
        ),
        compiler_params=pltpu.CompilerParams(
            dimension_semantics=("parallel",),       # megacore split on v7x
            vmem_limit_bytes=32 * 1024 * 1024,       # safe on every generation
        ),
    )(tok2d, fused_table)

    embeds = out[:N].reshape(B, T, out_dim)          # contiguous row slice only
    return embeds, mask


def _reference_forward(tokens, mask, embed_w, proj_w, proj_b):
    """Pure-JAX reference matching the PyTorch module (binary mask)."""
    emb = embed_w[tokens]                                            # (B, T, dim)
    proj = jnp.einsum("btd,od->bto", emb, proj_w,
                      precision=jax.lax.Precision.HIGHEST) + proj_b
    return proj * mask[..., None].astype(proj.dtype), mask


if __name__ == "__main__":
    # Small shapes consistent with the module.
    B, T = 2, 8
    n_bins, dim, output_dim = 64, 32, 48

    key = jax.random.PRNGKey(0)
    k_emb, k_w, k_b, k_tok = jax.random.split(key, 4)

    # Deterministic synthetic parameters (shapes from __init__):
    #   self.embed       = nn.Embedding(n_bins, dim)   -> (n_bins, dim)
    #   self.output_proj = nn.Linear(dim, output_dim)  -> W (output_dim, dim), b (output_dim,)
    embed_w = jax.random.normal(k_emb, (n_bins, dim), dtype=jnp.float32)
    bound = 1.0 / (dim ** 0.5)
    proj_w = jax.random.uniform(k_w, (output_dim, dim), jnp.float32, -bound, bound)
    proj_b = jax.random.uniform(k_b, (output_dim,), jnp.float32, -bound, bound)

    # Synthetic tokenizer output (what LUTConditioner.tokenize would produce).
    tokens = jax.random.randint(k_tok, (B, T), 0, n_bins, dtype=jnp.int32)
    lengths = jnp.array([T, 5], dtype=jnp.int32)
    mask = (jnp.arange(T)[None, :] < lengths[:, None]).astype(jnp.int32)  # (B, T)

    # Parameter prep (done once, outside the forward path).
    fused_table = jax.block_until_ready(prepare_fused_table(embed_w, proj_w, proj_b))

    embeds, out_mask = lut_conditioner_forward(tokens, mask, fused_table)
    embeds = jax.block_until_ready(embeds)

    ref_embeds, _ = _reference_forward(tokens, mask, embed_w, proj_w, proj_b)
    assert embeds.shape == (B, T, output_dim)
    assert jnp.allclose(embeds, ref_embeds, atol=1e-5, rtol=1e-5), "mismatch vs reference"
    assert jnp.array_equal(out_mask, mask)

    print("KERNEL_OK")
</pallas_src>

<mosaic_0001>
module attributes {stable_mosaic.version = 11 : i64} {
  func.func @_lut_conditioner_kernel(%arg0: i32, %arg1: memref<8x1xi32, #tpu.memory_space<vmem>>, %arg2: memref<64x48xf32, #tpu.memory_space<vmem>>, %arg3: memref<8x48xf32, #tpu.memory_space<vmem>>) attributes {dimension_semantics = [#tpu.dimension_semantics<parallel>], iteration_bounds = array<i64: 2>, scalar_prefetch = 0 : i64, scratch_operands = 0 : i64, tpu.core_type = #tpu.core_type<tc>, window_params = [{transform_indices = @transform_0, window_bounds = array<i64: 8, 1>}, {pipeline_mode = #tpu.pipeline_mode<synchronous>, transform_indices = @transform_1, window_bounds = array<i64: 64, 48>}, {transform_indices = @transform_2, window_bounds = array<i64: 8, 48>}]} {
    %c0 = arith.constant 0 : index
    %c0_0 = arith.constant 0 : index
    %0 = vector.load %arg1[%c0, %c0_0] : memref<8x1xi32, #tpu.memory_space<vmem>>, vector<8x1xi32>
    %1 = tpu.iota {dimensions = array<i32: 1>} : vector<8x64xi32>
    %2 = vector.broadcast %0 : vector<8x1xi32> to vector<8x64xi32>
    %3 = arith.cmpi eq, %2, %1 : vector<8x64xi32>
    %4 = arith.extui %3 : vector<8x64xi1> to vector<8x64xi32>
    %5 = arith.sitofp %4 : vector<8x64xi32> to vector<8x64xf32>
    %c0_1 = arith.constant 0 : index
    %c0_2 = arith.constant 0 : index
    %6 = vector.load %arg2[%c0_1, %c0_2] : memref<64x48xf32, #tpu.memory_space<vmem>>, vector<64x48xf32>
    %cst = arith.constant dense<0.000000e+00> : vector<8x48xf32>
    %7 = tpu.matmul %5, %6, %cst {dimension_numbers = #tpu.dot_dimension_numbers<[1], [0], [0], [1], [0, 0, 1, 1], [], []>, precision = #tpu.contract_precision<fp32>} : vector<8x64xf32>, vector<64x48xf32>, vector<8x48xf32> -> vector<8x48xf32>
    %c0_3 = arith.constant 0 : index
    %c0_4 = arith.constant 0 : index
    %8 = vector.load %arg3[%c0_3, %c0_4] : memref<8x48xf32, #tpu.memory_space<vmem>>, vector<8x48xf32>
    tpu.vector_store %arg3[%c0_3, %c0_4], %7 {strides = array<i32>} : memref<8x48xf32, #tpu.memory_space<vmem>>, vector<8x48xf32>,
    return
  }
  func.func @transform_0(%arg0: i32) -> (i32, i32) {
    %c0_i32 = arith.constant 0 : i32
    %c0_i32_0 = arith.constant 0 : i32
    return %arg0, %c0_i32 : i32, i32
  }
  func.func @transform_1(%arg0: i32) -> (i32, i32) {
    %c0_i32 = arith.constant 0 : i32
    %c0_i32_0 = arith.constant 0 : i32
    %c0_i32_1 = arith.constant 0 : i32
    return %c0_i32, %c0_i32_0 : i32, i32
  }
  func.func @transform_2(%arg0: i32) -> (i32, i32) {
    %c0_i32 = arith.constant 0 : i32
    %c0_i32_0 = arith.constant 0 : i32
    return %arg0, %c0_i32 : i32, i32
  }
}

</mosaic_0001>

<bundles_post_ra>
// kernel: tpu_custom_call.1
= control target key start
LH: loop header
LB: loop body
LE: loop exit
PB: predicated region body
PF: predicated region fallthrough
CT: control target
= control target key end

     0   :  { %7 = vsyncpa [#allocation3], 0  ;;  %s1390_s0 = inlined_call_operand.vmem [shape: s32[16,1], index: 0, kind: input, shape index: {}]   ;;  %s1391_s1 = inlined_call_operand.vmem [shape: f32[64,48], index: 1, kind: input, shape index: {}]   ;;  %s1392_s2 = inlined_call_operand.hbm [shape: f32[16,48], index: 2, kind: output, shape index: {}]  }
   0x1   :  { %9 = vsyncpa [#allocation3 + $0x1], 0  ;;  %s1163_s9 = smov 0   ;;  %s1165_s10 = smov 0  }
   0x2   :  { %s1167_s11 = smov 0   ;;  %s1169_s12 = smov 0  }
   0x3 LB: > { %s1184_s13 = sadd.s32 4294967295, %s1141_s12   ;;  %s772_s14 = sadd.s32 4294967294, %s1141_s12   ;;  %s1141_s12 = sphi %s1169_s12, %s1398_s12   ;;  %s1137_s11 = sphi %s1167_s11, %s1397_s11   ;;  %s1133_s10 = sphi %s1165_s10, %s1396_s10   ;;  %s1129_s9 = sphi %s1163_s9, %s1395_s9  }
   0x4   : > { %s1188_s15 = sadd.s32 1, %s1141_s12   ;;  %s69_s16 = sadd.s32 1, %s1137_s11 }
   0x5   : > { %s66_s17 = ssub.s32 %s1141_s12, %s1188_s15  ;;  %p79_p0 = scmp.ne.s32.totalorder %s1137_s11, %s1133_s10 }
   0x6   : > { %p67_p1 = scmp.eq.s32.totalorder %s66_s17, 0  ;;  %p80_p2 = scmp.eq.s32.totalorder %s1184_s13, 1 }
   0x7   : > { %p85_p3 = scmp.ne.s32.totalorder %s1133_s10, %s1129_s9  ;;  %p86_p4 = scmp.eq.s32.totalorder %s772_s14, 1 }
   0x8   : > { %s1199_s18 = scalar_select %p67_p1, %s1137_s11, %s69_s16  }
   0x9   : > { %p1201_p5 = por %p80_p2, %p79_p0  ;;  %p1205_p6 = por %p86_p4, %p85_p3 }
   0xa   : > { %p775_p7 = scmp.ge.s32.totalorder %s1141_s12, 1  ;;  %p114_p8 = scmp.lt.s32.totalorder %s1141_s12, 3 }
   0xc   : > { %p115_p9 = pnand %p775_p7, %p114_p8 }
   0xd   : > { %p135_p10 = scmp.lt.s32.totalorder (!%p115_p9), %s1184_s13, 1  ;;  %v148_v0 = vld [vmem:[%s1391_s1] sm:$0xff] (!%p115_p9)  ;;  %v149_v1 = vld [vmem:[%s1391_s1 + $0x8] sm:$0xff] (!%p115_p9)  ;;  %v150_v2 = vld [vmem:[%s1391_s1 + $0x10] sm:$0xff] (!%p115_p9)  ;;  %v1143_v3 = vmov (!%p115_p9), 0   ;;  %v1144_v4 = vmov (!%p115_p9), 0.0|0.0  }
   0xe   : > { %118 = sbr.rel (%p115_p9) target bundleno = 425 (0x1a9), region = 28  ;;  %1078 = vset.pattern.permute.xlu0 (!%p115_p9), %v1143_v3  ;;  %990 = vmatprep.subr.bf16.mxu0 (!%p115_p9), %v1144_v4  ;;  %v161_v5 = vand.u32 (!%p115_p9), 4294901760, %v148_v0  ;;  %v164_v6 = vand.u32 (!%p115_p9), 4294901760, %v149_v1  ;;  %v151_v7 = vld [vmem:[%s1391_s1 + $0x18] sm:$0xff] (!%p115_p9)  ;;  %v167_v8 = vand.u32 (!%p115_p9), 4294901760, %v150_v2  ;;  %v152_v9 = vld [vmem:[%s1391_s1 + $0x20] sm:$0xff] (!%p115_p9) }
   0xf   : > { %v153_v10 = vld [vmem:[%s1391_s1 + $0x28] sm:$0xff] (!%p115_p9)  ;;  %954 = vmatprep.subr.bf16.mxu1 (!%p115_p9), %v1144_v4  ;;  %v170_v11 = vand.u32 (!%p115_p9), 4294901760, %v151_v7  ;;  %v173_v12 = vand.u32 (!%p115_p9), 4294901760, %v152_v9  ;;  %v154_v22 = vld [vmem:[%s1391_s1 + $0x30] sm:$0xff] (!%p115_p9)  ;;  %v155_v23 = vld [vmem:[%s1391_s1 + $0x38] sm:$0xff] (!%p115_p9)  ;;  %vm1145_vm0 = vmmov (!%p115_p9), 0  }
  0x10   : > { %v176_v13 = vand.u32 (!%p115_p9), 4294901760, %v153_v10  ;;  %v1235_v14 = vpack.c.bf16 (!%p115_p9), %v164_v6, %v161_v5  ;;  %v1237_v15 = vsub.f32 (!%p115_p9), %v148_v0, %v161_v5  ;;  %v1239_v16 = vsub.f32 (!%p115_p9), %v149_v1, %v164_v6  ;;  %s132_s23 = sand.u32 (!%p115_p9), 1, %s1133_s10   ;;  %s783_s25 = sshll.u32 (!%p115_p9), %s1184_s13, 7 }
  0x11   : > { %v1241_v17 = vsub.f32 (!%p115_p9), %v150_v2, %v167_v8  ;;  %v1243_v18 = vsub.f32 (!%p115_p9), %v151_v7, %v170_v11  ;;  %v1245_v19 = vsub.f32 (!%p115_p9), %v152_v9, %v173_v12  ;;  %v1252_v20 = vpack.c.bf16 (!%p115_p9), %v170_v11, %v167_v8  ;;  %s776_s24 = sshll.u32 (!%p115_p9), %s132_s23, 3  ;;  %s1348_s30 = scalar_lea.hbm (!%p115_p9), %s1392_s2, %s783_s25 }
  0x12   : > { %992 = vmatpush3.bf16.msra.mxu0 (!%p115_p9), %v1235_v14  ;;  %956 = vmatpush3.bf16.msra.mxu1 (!%p115_p9), %v1235_v14  ;;  %v1254_v21 = vsub.f32 (!%p115_p9), %v153_v10, %v176_v13  ;;  %v179_v25 = vand.u32 (!%p115_p9), 4294901760, %v154_v22  ;;  %v182_v26 = vand.u32 (!%p115_p9), 4294901760, %v155_v23  ;;  %v1266_v27 = vpack.c.bf16 (!%p115_p9), %v176_v13, %v173_v12  ;;  %s134_s26 = scalar_lea.vmem (!%p115_p9), [#allocation2], %s776_s24  ;;  %s700_s3 = scalar_lea.sflag (!%p115_p9), [#allocation3], %s132_s23 }
  0x13   : > { %993 = vmatprep.subr.bf16.mxu0 (!%p115_p9), %v1144_v4  ;;  %957 = vmatprep.subr.bf16.mxu1 (!%p115_p9), %v1144_v4  ;;  %v246_v30 = vand.u32 (!%p115_p9), 4294901760, %v1237_v15  ;;  %v1146_v31 = vmov (!%p115_p9), 0.0   ;;  %v253_v32 = vand.u32 (!%p115_p9), 4294901760, %v1239_v16  ;;  %v260_v39 = vand.u32 (!%p115_p9), 4294901760, %v1241_v17  ;;  %s713_s27 = sshll.u32 (!%p115_p9), %s134_s26, 4  ;;  %s1350_s27 = int_to_ptr.vmem [resolvable:$true] %s713_s27 }
  0x14   : > { %v1270_v28 = vsub.f32 (!%p115_p9), %v154_v22, %v179_v25  ;;  %v1272_v29 = vsub.f32 (!%p115_p9), %v155_v23, %v182_v26  ;;  %913 = vmatprep.mubr.msk.f32.mxu0 (!%p115_p9), %vm1145_vm0, %v1146_v31  ;;  %856 = vmatprep.mubr.msk.f32.mxu1 (!%p115_p9), %vm1145_vm0, %v1146_v31  ;;  %v1280_v33 = vpack.c.bf16 (!%p115_p9), %v182_v26, %v179_v25  ;;  %v267_v40 = vand.u32 (!%p115_p9), 4294901760, %v1243_v18  ;;  %s1079_s4 = scalar_lea.vmem (!%p115_p9), %s1350_s27, 128 }
  0x15   : > { %s136_s5 = scalar_select %p135_p10, %s1184_s13, 1  ;;  %v1003_v34 = vpack.c.bf16 %v253_v32, %v246_v30  ;;  %v247_v35 = vsub.f32 %v1237_v15, %v246_v30  ;;  %v254_v36 = vsub.f32 %v1239_v16, %v253_v32  ;;  %v261_v43 = vsub.f32 %v1241_v17, %v260_v39 }
  0x16   : > { %995 = vmatpush3.bf16.msra.mxu0 %v1252_v20  ;;  %959 = vmatpush3.bf16.msra.mxu1 %v1252_v20  ;;  %v1006_v42 = vpack.c.bf16 %v267_v40, %v260_v39  ;;  %v268_v44 = vsub.f32 %v1243_v18, %v267_v40  ;;  %v274_v46 = vand.u32 4294901760, %v1245_v19  ;;  %v281_v47 = vand.u32 4294901760, %v1254_v21  ;;  %p1080_p11 = scmp.ne.s32.totalorder %s1350_s27, %s1079_s4  ;;  %s1147_s13 = smov [#allocation2]  }
  0x17   : > { %s777_s6 = sshll.u32 %s136_s5, 3  ;;  %996 = vmatprep.subr.bf16.mxu0 %v1144_v4  ;;  %960 = vmatprep.subr.bf16.mxu1 %v1144_v4  ;;  %v248_v37 = vand.u32 4294901760, %v247_v35  ;;  %v255_v38 = vand.u32 4294901760, %v254_v36  ;;  %v262_v45 = vand.u32 4294901760, %v261_v43  ;;  %v288_v55 = vand.u32 4294901760, %v1270_v28  ;;  %s1083_s5 = sshll.u32 %s1147_s13, 4  ;;  %s1084_s5 = int_to_ptr.vmem [resolvable:$false] %s1083_s5 }
  0x18   : > { %s138_s14 = scalar_lea.vmem %s1390_s0, %s777_s6  ;;  %v269_v48 = vand.u32 4294901760, %v268_v44  ;;  %v1009_v49 = vpack.c.bf16 %v281_v47, %v274_v46  ;;  %v275_v50 = vsub.f32 %v1245_v19, %v274_v46  ;;  %v282_v51 = vsub.f32 %v1254_v21, %v281_v47  ;;  %p1081_p12 = pnand %p1080_p11, %p1201_p5 }
  0x19   : > { %v139_v24 = vld [vmem:[%s138_s14] sm:$0xff]  ;;  %v967_v41 = vpack.c.bf16 %v255_v38, %v248_v37  ;;  %v295_v56 = vand.u32 4294901760, %v1272_v29  ;;  %v289_v59 = vsub.f32 %v1270_v28, %v288_v55  ;;  %v979_v0 = vpack.c.bf16 %v1239_v16, %v1237_v15  ;;  %s1085_s6 = scalar_lea.vmem %s1084_s5, 256  ;;  %p1086_p0 = scmp.lt.s32.totalorder %s1350_s27, %s1084_s5 }
  0x1a   : > { %143 = vperm.xlu0 %1078, %v139_v24   ;;  %998 = vmatpush3.bf16.msra.mxu0 %v1266_v27  ;;  %v970_v52 = vpack.c.bf16 %v269_v48, %v262_v45  ;;  %v276_v53 = vand.u32 4294901760, %v275_v50  ;;  %v283_v54 = vand.u32 4294901760, %v282_v51  ;;  %v982_v1 = vpack.c.bf16 %v1243_v18, %v1241_v17  ;;  %p1082_p13 = pneg %p1081_p12  ;;  %p1087_p1 = scmp.lt.s32.totalorder %s1085_s6, %s1079_s4 }
  0x1b   : > { %962 = vmatpush3.bf16.msra.mxu1 %v1266_v27  ;;  %999 = vmatprep.subr.bf16.mxu0 %v1144_v4  ;;  %v1012_v58 = vpack.c.bf16 %v295_v56, %v288_v55  ;;  %v296_v60 = vsub.f32 %v1272_v29, %v295_v56  ;;  %v290_v61 = vand.u32 4294901760, %v289_v59  ;;  %v985_v2 = vpack.c.bf16 %v1254_v21, %v1245_v19 }
  0x1c   : > { %963 = vmatprep.subr.bf16.mxu1 %v1144_v4  ;;  %v973_v57 = vpack.c.bf16 %v283_v54, %v276_v53  ;;  %v988_v3 = vpack.c.bf16 %v1272_v29, %v1270_v28  ;;  %v140_v5 = vlaneseq  ;;  %vm156_vm1 = vcmask 523264   ;;  %p1088_p2 = por %p1087_p1, %p1086_p0 }
  0x1d   : > { %v297_v62 = vand.u32 4294901760, %v296_v60  ;;  %vm697_vm3 = vcmask 392192  }
  0x1e   : > { %1001 = vmatpush3.bf16.msra.mxu0 %v1280_v33  ;;  %v141_v6 = vand.u32 127, %v140_v5  ;;  %p1089_p3 = pnand %p1088_p2, %p1082_p13 }
  0x1f   : > { %965 = vmatpush3.bf16.msra.mxu1 %v1280_v33  ;;  %1002 = vmatprep.subr.bf16.mxu0 %v1144_v4  ;;  %v976_v63 = vpack.c.bf16 %v297_v62, %v290_v61 }
  0x20   : > { %966 = vmatprep.subr.bf16.mxu1 %v1144_v4 }
  0x99   : > { %v144_v7 = vpop.permute.xlu0 %143 }
  0x9a   : > { %vm145_vm2 = vcmp.eq.s32.totalorder %v144_v7, %v141_v6 }
  0x9b   : > { %v778_v8 = vsel %vm145_vm2, 1.0, %v1146_v31 }
  0x9c   : > { %v158_v9 = vsel %vm156_vm1, %v778_v8, 0 }
  0x9d   : > { %v234_v10 = vsub.f32 %v158_v9, %v158_v9 }
  0x9f   : > { %v235_v11 = vand.u32 4294901760, %v234_v10 }
  0xa1   : > { %914 = vmatmul.mubr.f32.vlgmr.msra.gmra.mrb[0].mxu0 %v235_v11  ;;  %v236_v12 = vsub.f32 %v234_v10, %v235_v11 }
  0xa2   : > { %1004 = vmatpush3.bf16.msra.mxu0 %v1003_v34  ;;  %932 = vmatprep.mubr.msk.f32.mxu0 %vm1145_vm0, %v1146_v31 }
  0xa3   : > { %1005 = vmatprep.subr.bf16.mxu0 %v1144_v4  ;;  %v237_v13 = vand.u32 4294901760, %v236_v12 }
  0xa5   : > { %857 = vmatmul.mubr.f32.vlgmr.msra.gmra.mrb[0].mxu1 %v237_v13 }
  0xa6   : > { %968 = vmatpush3.bf16.msra.mxu1 %v967_v41  ;;  %1007 = vmatpush3.bf16.msra.mxu0 %v1006_v42 }
  0xa7   : > { %969 = vmatprep.subr.bf16.mxu1 %v1144_v4  ;;  %1008 = vmatprep.subr.bf16.mxu0 %v1144_v4 }
  0xa8   : > { %875 = vmatprep.mubr.msk.f32.mxu1 %vm1145_vm0, %v1146_v31 }
  0xaa   : > { %971 = vmatpush3.bf16.msra.mxu1 %v970_v52  ;;  %1010 = vmatpush3.bf16.msra.mxu0 %v1009_v49 }
  0xab   : > { %972 = vmatprep.subr.bf16.mxu1 %v1144_v4  ;;  %1011 = vmatprep.subr.bf16.mxu0 %v1144_v4 }
  0xae   : > { %974 = vmatpush3.bf16.msra.mxu1 %v973_v57  ;;  %1013 = vmatpush3.bf16.msra.mxu0 %v1012_v58 }
  0xaf   : > { %975 = vmatprep.subr.bf16.mxu1 %v1144_v4  ;;  %1014 = vmatprep.subr.bf16.mxu0 %v1144_v4 }
  0xb1   : > { %933 = vmatmul.mubr.msk.f32.vlgmr.msra.gmra.mrb[0].mxu0 %vm156_vm1, %v778_v8 }
  0xb2   : > { %977 = vmatpush3.bf16.msra.mxu1 %v976_v63  ;;  %1016 = vmatpush3.bf16.msra.mxu0 %v1235_v14 }
  0xb3   : > { %978 = vmatprep.subr.bf16.mxu1 %v1144_v4  ;;  %1017 = vmatprep.subr.bf16.mxu0 %v1144_v4 }
  0xb4   : > { %951 = vmatprep.mubr.msk.f32.mxu0 %vm1145_vm0, %v1146_v31 }
  0xb5   : > { %876 = vmatmul.mubr.msk.f32.vlgmr.msra.gmra.mrb[0].mxu1 %vm156_vm1, %v778_v8 }
  0xb6   : > { %980 = vmatpush3.bf16.msra.mxu1 %v979_v0  ;;  %1019 = vmatpush3.bf16.msra.mxu0 %v1252_v20 }
  0xb7   : > { %981 = vmatprep.subr.bf16.mxu1 %v1144_v4  ;;  %1020 = vmatprep.subr.bf16.mxu0 %v1144_v4 }
  0xb8   : > { %894 = vmatprep.mubr.msk.f32.mxu1 %vm1145_vm0, %v1146_v31 }
  0xba   : > { %983 = vmatpush3.bf16.msra.mxu1 %v982_v1  ;;  %1022 = vmatpush3.bf16.msra.mxu0 %v1266_v27 }
  0xbb   : > { %984 = vmatprep.subr.bf16.mxu1 %v1144_v4  ;;  %1023 = vmatprep.subr.bf16.mxu0 %v1144_v4 }
  0xbe   : > { %986 = vmatpush3.bf16.msra.mxu1 %v985_v2  ;;  %1025 = vmatpush3.bf16.msra.mxu0 %v1280_v33 }
  0xbf   : > { %987 = vmatprep.subr.bf16.mxu1 %v1144_v4 }
  0xc1   : > { %952 = vmatmul.mubr.msk.f32.vlgmr.msra.gmra.mrb[0].mxu0 %vm156_vm1, %v778_v8 }
  0xc2   : > { %989 = vmatpush3.bf16.msra.mxu1 %v988_v3 }
  0xc5   : > { %895 = vmatmul.mubr.f32.vlgmr.msra.gmra.mrb[0].mxu1 %v234_v10 }
 0x194   : > { %v693_v14 = vpop.f32.mrb[0].mxu0 }
 0x195   : > { %v953_v15 = vpop.f32.mrb[1].mxu0 }
 0x198   : > { %v438_v16 = vpop.f32.mrb[0].mxu1 }
 0x199   : > { %v1026_v17 = vadd.f32 %v693_v14, %v438_v16  ;;  %v896_v18 = vpop.f32.mrb[1].mxu1 }
 0x19b   : > { %698 = vst.msk [vmem:[%s134_s26] sm:$0xff] %vm697_vm3, %v1026_v17 }
 0x19c   : > { %1092 = shalt.err (!%p1089_p3)
}
 0x19d   : > { %s1093_s7 = scalar_lea.hbm %s1348_s30, 128  ;;  %s1097_s16 = scalar_lea.hbm %s1392_s2, 256 }
 0x19e   : > { %p1094_p4 = scmp.ne.s32.totalorder %s1348_s30, %s1093_s7  ;;  %p1098_p9 = scmp.lt.u32.totalorder %s1348_s30, %s1392_s2 }
 0x19f   : > { %p1099_p10 = scmp.lt.u32.totalorder %s1097_s16, %s1093_s7  ;;  %p1101_p12 = scmp.lt.u32.totalorder %s1093_s7, %s1348_s30 }
 0x1a0   : > { %p1095_p7 = pnand %p1094_p4, %p1201_p5 }
 0x1a1   : > { %p1100_p11 = por %p1099_p10, %p1098_p9 }
 0x1a2   : > { %p1096_p8 = pneg %p1095_p7 }
 0x1a3   : > { %p1102_p13 = por %p1101_p12, %p1100_p11 }
 0x1a5   : > { %p1103_p0 = pnand %p1102_p13, %p1096_p8 }
 0x1a7   : > { %1106 = shalt.err (!%p1103_p0)
}
 0x1a8   : > { %1035 = dma.vmem_to_hbm [thread:$0]  (%p1201_p5), %s1350_s27, 128, %s1348_s30, %s700_s3  }
 0x1a9 PF: > { %p1041_p1 = scmp.ge.s32.totalorder %s1141_s12, 2  ;;  %s725_s22 = sand.u32 1, %s1129_s9  }
 0x1aa   : > { %s726_s23 = scalar_lea.sflag [#allocation3], %s725_s22 }
 0x1ab   : > { %p1038_p2 = pnand %p1041_p1, %p1205_p6 }
 0x1ad   : > { %1124 = dma.done.wait (!%p1038_p2), %s726_s23, 128  }
 0x1ae   : > { %1126 = vsyncadd (!%p1038_p2), %s726_s23, 4294967168  ;;  %p12_p3 = scmp.ge.s32.totalorder %s1188_s15, 4   ;;  %s1395_s9 = smov %s1133_s10 }
 0x1af   : > { %s1396_s10 = smov %s1137_s11  ;;  %s1397_s11 = smov %s1199_s18 }
 0x1b0   : > { %s1398_s12 = smov %s1188_s15  ;;  %14 = sbr.rel (!%p12_p3) target bundleno = 3 (0x3), region = 63 }
 0x1b7   :  { %731 = vsyncpa [#allocation3], 1 }
 0x1b8   :  { %733 = vsyncpa [#allocation3 + $0x1], 1 }

</bundles_post_ra>
